<compile_context>
chip_gen: v7x
topology: tpu7x:2x2x1
jax: 0.10.0
libtpu: 0.0.40
codegen_flags: <defaults>
</compile_context>

<pallas_src>
import functools

import jax
import jax.numpy as jnp
from jax.experimental import pallas as pl
from jax.experimental.pallas import tpu as pltpu


def _round_up(a, b):
    return ((a + b - 1) // b) * b


def _vmem_capacity_bytes():
    try:
        return int(pltpu.get_tpu_info().vmem_capacity_bytes)
    except Exception:
        return 64 * 1024 * 1024          # v7x worst case: safe everywhere


def _grl2d_kernel(x_ref, p_ref, w_ref, fc_ref, o_ref, xn_ref, h1_ref, *,
                  eps, t1, t2, t1p, t2p):
    """One batch block: LN -> conv1(k3,s2)+SiLU -> conv2(k3,s2)+SiLU -> mean_T -> Linear."""
    f32 = jnp.float32
    w_dtype = w_ref.dtype
    bb, T, C = x_ref.shape
    Tn = xn_ref.shape[1]
    T1h = h1_ref.shape[1]

    gamma = p_ref[0:1, :].astype(f32)     # [1, C]
    beta = p_ref[1:2, :].astype(f32)
    bc1 = p_ref[2:3, :].astype(f32)
    bc2 = p_ref[3:4, :].astype(f32)

    def silu(v):
        # sigmoid(v) == 0.5*tanh(0.5*v) + 0.5 (exact identity); tanh rides the EUP.
        return v * (0.5 * jnp.tanh(0.5 * v) + 0.5)

    # ---- LayerNorm of the whole block, computed exactly once per row (f32 stats).
    xv = x_ref[...].astype(f32)                            # [bb, T, C]
    mu = jnp.mean(xv, axis=-1, keepdims=True)
    cen = xv - mu
    var = jnp.mean(cen * cen, axis=-1, keepdims=True)
    ln = (cen * jax.lax.rsqrt(var + eps)) * gamma + beta
    if Tn > T:   # zero the time-pad rows that the padded strided taps may read
        xn_ref[:, T:Tn, :] = jnp.zeros((bb, Tn - T, C), w_dtype)
    xn_ref[:, 0:T, :] = ln.astype(w_dtype)

    # ---- Conv1d #1 (kernel=3, stride=2): one MXU matmul per tap, M = bb*t1p.
    acc1 = bc1                                             # broadcasts to [bb*t1p, C]
    for k in range(3):
        tap = xn_ref[:, pl.ds(k, t1p, stride=2), :].reshape(bb * t1p, C)
        acc1 = acc1 + jnp.dot(tap, w_ref[k], preferred_element_type=f32)
    if T1h > t1p:
        h1_ref[:, t1p:T1h, :] = jnp.zeros((bb, T1h - t1p, C), w_dtype)
    h1_ref[:, 0:t1p, :] = silu(acc1).reshape(bb, t1p, C).astype(w_dtype)

    # ---- Conv1d #2 (kernel=3, stride=2) + SiLU: one MXU matmul per tap, M = bb*t2p.
    acc2 = bc2
    for k in range(3):
        tap = h1_ref[:, pl.ds(k, t2p, stride=2), :].reshape(bb * t2p, C)
        acc2 = acc2 + jnp.dot(tap, w_ref[3 + k], preferred_element_type=f32)
    h2 = silu(acc2).reshape(bb, t2p, C)                    # frames >= t2 are pad, ignored

    # ---- AdaptiveAvgPool2d((1, None)): mean over the t2 valid output frames.
    pooled = jnp.sum(h2[:, 0:t2, :], axis=1) * (1.0 / float(t2))   # [bb, C] f32

    # ---- Final Linear into a lane-dense (128-padded) output slab.
    w3 = fc_ref[0:C, :]                                    # [C, o_pad]
    b3 = fc_ref[C:C + 1, :].astype(f32)                    # [1, o_pad]
    out = jnp.dot(pooled.astype(w_dtype), w3, preferred_element_type=f32) + b3
    o_ref[...] = out.astype(o_ref.dtype)


def grl2d_classifier(x, gamma, beta, conv1_w, conv1_b, conv2_w, conv2_b,
                     fc_w, fc_b, *, eps=1e-5, block_b=256):
    """Forward pass of GRL2dClassfier (GRL is identity in forward).

    x:       [B, T, C]
    conv*_w: [K=3, C_in, C_out]  (PyTorch Conv1d weight [C_out, C_in, K].permute(2,1,0))
    conv*_b: [C]
    fc_w:    [C, out_dims]       (PyTorch Linear weight transposed)
    fc_b:    [out_dims]
    returns  [B, out_dims]
    """
    B, T, C = x.shape
    O = fc_w.shape[1]
    t1 = (T - 3) // 2 + 1
    t2 = (t1 - 3) // 2 + 1
    if T < 7 or t2 < 1:
        raise ValueError("sequence too short for two stride-2, kernel-3 convs")

    w_dtype = conv1_w.dtype
    x_it = jnp.dtype(x.dtype).itemsize
    w_it = jnp.dtype(w_dtype).itemsize

    # Frame counts padded to multiples of 8 -> tile-aligned reshapes inside the kernel.
    t1p = _round_up(t1, 8)
    t2p = _round_up(t2, 8)
    Tn = max(T, 2 * t1p + 1)      # xn scratch time extent (covers padded taps)
    T1h = max(t1p, 2 * t2p + 1)   # h1 scratch time extent

    # Lane-dense output slab: pad out_dims to a multiple of 128 (unmasked vst).
    o_pad = max(128, _round_up(O, 128))
    fc_slab = jnp.concatenate(
        [jnp.pad(fc_w, ((0, 0), (0, o_pad - O))),
         jnp.pad(fc_b, (0, o_pad - O)).reshape(1, o_pad)],
        axis=0).astype(w_dtype)                                        # [C+1, o_pad]

    # Per-channel params packed into one slab; both conv weights into one slab.
    params = jnp.stack([gamma, beta, conv1_b, conv2_b], axis=0)        # [4, C]
    conv_slab = jnp.concatenate([conv1_w, conv2_w], axis=0).astype(w_dtype)   # [6, C, C]

    # ---- Generation-aware VMEM budget (v7x: 64 MiB/TC, v5e/v6e: 128 MiB).
    vmem_cap = _vmem_capacity_bytes()
    vmem_limit = max(32 << 20, min((vmem_cap * 3) // 4, 96 << 20))
    fixed = 2 * (params.size * params.dtype.itemsize                   # invariants are
                 + conv_slab.size * conv_slab.dtype.itemsize           # double-buffered
                 + fc_slab.size * fc_slab.dtype.itemsize)              # by default
    per_row = (2 * T * C * x_it                                        # x double buffer
               + Tn * C * w_it + T1h * C * w_it                        # LN / h1 scratches
               + 2 * o_pad * x_it                                      # out double buffer
               + (3 * T + 2 * t1p + 2 * t2p) * C * 4)                  # live f32 temps
    avail = vmem_limit - fixed - (6 << 20)                             # compiler headroom
    cap = max(1, avail // per_row)

    sub = {1: 32, 2: 16, 4: 8}.get(x_it, 8)       # dtype-aware sublane packing
    bb = min(block_b, B, cap)
    if B >= 2 * sub:
        # v7x has two TensorCores: keep >= 2 grid steps so the parallel axis shards.
        bb = min(bb, _round_up((B + 1) // 2, sub))
    if bb < B:
        bb = max(sub, (bb // sub) * sub)
    bb = max(1, bb)
    b_pad = pl.cdiv(B, bb) * bb
    xp = x if b_pad == B else jnp.pad(x, ((0, b_pad - B), (0, 0), (0, 0)))
    grid = (b_pad // bb,)

    flops = int(b_pad * (8 * T * C
                         + 6 * C * C * (t1p + t2p) + 6 * C * (t1p + t2p)
                         + t2 * C + 2 * C * o_pad + o_pad))
    transcendentals = int(b_pad * (C * (t1p + t2p) + T))
    bytes_accessed = int(xp.size * x_it + b_pad * o_pad * x_it
                         + params.size * params.dtype.itemsize
                         + conv_slab.size * conv_slab.dtype.itemsize
                         + fc_slab.size * fc_slab.dtype.itemsize)

    kernel = functools.partial(_grl2d_kernel, eps=eps, t1=t1, t2=t2,
                               t1p=t1p, t2p=t2p)

    # TODO(synk): mark the grid-invariant weight specs pipeline_mode=pl.Buffered(1)
    # once single-buffered pipelining is verified on all generations; until then
    # their double buffers are counted in the VMEM budget above.
    out_p = pl.pallas_call(
        kernel,
        out_shape=jax.ShapeDtypeStruct((b_pad, o_pad), x.dtype),
        grid_spec=pltpu.PrefetchScalarGridSpec(
            num_scalar_prefetch=0,
            grid=grid,
            in_specs=[
                pl.BlockSpec((bb, T, C), lambda i: (i, 0, 0)),      # x batch block
                pl.BlockSpec((4, C), lambda i: (0, 0)),             # gamma/beta/b1/b2
                pl.BlockSpec((6, C, C), lambda i: (0, 0, 0)),       # conv1+conv2 weights
                pl.BlockSpec((C + 1, o_pad), lambda i: (0, 0)),     # fc weight+bias
            ],
            out_specs=pl.BlockSpec((bb, o_pad), lambda i: (i, 0)),
            scratch_shapes=[
                pltpu.VMEM((bb, Tn, C), w_dtype),                   # LayerNorm'd x
                pltpu.VMEM((bb, T1h, C), w_dtype),                  # conv1 activations
            ],
        ),
        compiler_params=pltpu.CompilerParams(
            dimension_semantics=("parallel",),
            vmem_limit_bytes=int(vmem_limit),
        ),
        cost_estimate=pl.CostEstimate(flops=flops,
                                      transcendentals=transcendentals,
                                      bytes_accessed=bytes_accessed),
    )(xp, params, conv_slab, fc_slab)

    return out_p[:B, :O]


def _reference(x, gamma, beta, conv1_w, conv1_b, conv2_w, conv2_b, fc_w, fc_b,
               eps=1e-5):
    """Pure-JAX reference (independent path via lax.conv_general_dilated)."""
    xf = x.astype(jnp.float32)
    mean = xf.mean(-1, keepdims=True)
    var = ((xf - mean) ** 2).mean(-1, keepdims=True)
    xn = (xf - mean) * jax.lax.rsqrt(var + eps) * gamma + beta
    dn = ("NWC", "WIO", "NWC")
    hi = jax.lax.Precision.HIGHEST
    h = jax.lax.conv_general_dilated(xn, conv1_w, window_strides=(2,),
                                     padding="VALID", dimension_numbers=dn,
                                     precision=hi) + conv1_b
    h = h * jax.nn.sigmoid(h)
    h = jax.lax.conv_general_dilated(h, conv2_w, window_strides=(2,),
                                     padding="VALID", dimension_numbers=dn,
                                     precision=hi) + conv2_b
    h = h * jax.nn.sigmoid(h)
    pooled = h.mean(axis=1)                 # AdaptiveAvgPool2d((1, None)) + squeeze(1)
    return (jnp.dot(pooled, fc_w, precision=hi) + fc_b).astype(x.dtype)


if __name__ == "__main__":
    B, T, C, O = 2, 16, 32, 16        # batch=2, seq=16, hidden=32, out_dims=16
    key = jax.random.PRNGKey(0)
    kx, k1, kb1, k2, kb2, k3, kb3 = jax.random.split(key, 7)

    x = jax.random.normal(kx, (B, T, C), jnp.float32)

    gamma = jnp.ones((C,), jnp.float32)          # nn.LayerNorm default affine
    beta = jnp.zeros((C,), jnp.float32)
    # Conv1d weights stored as [K, C_in, C_out] (= PyTorch [C_out, C_in, K] permuted (2,1,0)).
    lim1 = 1.0 / jnp.sqrt(3.0 * C)
    conv1_w = jax.random.uniform(k1, (3, C, C), jnp.float32, -1.0, 1.0) * lim1
    conv1_b = jax.random.uniform(kb1, (C,), jnp.float32, -1.0, 1.0) * lim1
    conv2_w = jax.random.uniform(k2, (3, C, C), jnp.float32, -1.0, 1.0) * lim1
    conv2_b = jax.random.uniform(kb2, (C,), jnp.float32, -1.0, 1.0) * lim1
    # Linear weight stored as [C_in, out_dims] (= PyTorch weight.T).
    lim3 = 1.0 / jnp.sqrt(float(C))
    fc_w = jax.random.uniform(k3, (C, O), jnp.float32, -1.0, 1.0) * lim3
    fc_b = jax.random.uniform(kb3, (O,), jnp.float32, -1.0, 1.0) * lim3

    out = grl2d_classifier(x, gamma, beta, conv1_w, conv1_b,
                           conv2_w, conv2_b, fc_w, fc_b)
    out = jax.block_until_ready(out)

    ref = _reference(x, gamma, beta, conv1_w, conv1_b, conv2_w, conv2_b, fc_w, fc_b)
    assert out.shape == (B, O), out.shape
    max_err = float(jnp.max(jnp.abs(out.astype(jnp.float32) - ref.astype(jnp.float32))))
    assert max_err < 2e-4, max_err

    print("KERNEL_OK")
</pallas_src>

<mosaic_0001>
module attributes {stable_mosaic.version = 11 : i64} {
  func.func @_grl2d_kernel(%arg0: i32, %arg1: memref<2x16x32xf32, #tpu.memory_space<vmem>>, %arg2: memref<4x32xf32, #tpu.memory_space<vmem>>, %arg3: memref<6x32x32xf32, #tpu.memory_space<vmem>>, %arg4: memref<33x128xf32, #tpu.memory_space<vmem>>, %arg5: memref<2x128xf32, #tpu.memory_space<vmem>>, %arg6: memref<2x17x32xf32, #tpu.memory_space<vmem>>, %arg7: memref<2x17x32xf32, #tpu.memory_space<vmem>>) attributes {dimension_semantics = [#tpu.dimension_semantics<parallel>], iteration_bounds = array<i64: 1>, scalar_prefetch = 0 : i64, scratch_operands = 2 : i64, tpu.core_type = #tpu.core_type<tc>, window_params = [{transform_indices = @transform_0, window_bounds = array<i64: 2, 16, 32>}, {pipeline_mode = #tpu.pipeline_mode<synchronous>, transform_indices = @transform_1, window_bounds = array<i64: 4, 32>}, {pipeline_mode = #tpu.pipeline_mode<synchronous>, transform_indices = @transform_2, window_bounds = array<i64: 6, 32, 32>}, {pipeline_mode = #tpu.pipeline_mode<synchronous>, transform_indices = @transform_3, window_bounds = array<i64: 33, 128>}, {transform_indices = @transform_4, window_bounds = array<i64: 2, 128>}]} {
    %c0 = arith.constant 0 : index
    %c0_0 = arith.constant 0 : index
    %0 = vector.load %arg2[%c0, %c0_0] : memref<4x32xf32, #tpu.memory_space<vmem>>, vector<1x32xf32>
    %c1 = arith.constant 1 : index
    %c0_1 = arith.constant 0 : index
    %1 = vector.load %arg2[%c1, %c0_1] : memref<4x32xf32, #tpu.memory_space<vmem>>, vector<1x32xf32>
    %c2 = arith.constant 2 : index
    %c0_2 = arith.constant 0 : index
    %2 = vector.load %arg2[%c2, %c0_2] : memref<4x32xf32, #tpu.memory_space<vmem>>, vector<1x32xf32>
    %c3 = arith.constant 3 : index
    %c0_3 = arith.constant 0 : index
    %3 = vector.load %arg2[%c3, %c0_3] : memref<4x32xf32, #tpu.memory_space<vmem>>, vector<1x32xf32>
    %c0_4 = arith.constant 0 : index
    %c0_5 = arith.constant 0 : index
    %c0_6 = arith.constant 0 : index
    %4 = vector.load %arg1[%c0_4, %c0_5, %c0_6] : memref<2x16x32xf32, #tpu.memory_space<vmem>>, vector<2x16x32xf32>
    %cst = arith.constant dense<0.000000e+00> : vector<2x16xf32>
    %5 = vector.multi_reduction <add>, %4, %cst [2] : vector<2x16x32xf32> to vector<2x16xf32>
    %6 = vector.shape_cast %5 : vector<2x16xf32> to vector<2x16x1xf32>
    %cst_7 = arith.constant 3.200000e+01 : f32
    %7 = vector.broadcast %cst_7 : f32 to vector<2x16x1xf32>
    %8 = arith.divf %6, %7 : vector<2x16x1xf32>
    %9 = vector.broadcast %8 : vector<2x16x1xf32> to vector<2x16x32xf32>
    %10 = arith.subf %4, %9 : vector<2x16x32xf32>
    %11 = arith.mulf %10, %10 : vector<2x16x32xf32>
    %cst_8 = arith.constant dense<0.000000e+00> : vector<2x16xf32>
    %12 = vector.multi_reduction <add>, %11, %cst_8 [2] : vector<2x16x32xf32> to vector<2x16xf32>
    %13 = vector.shape_cast %12 : vector<2x16xf32> to vector<2x16x1xf32>
    %cst_9 = arith.constant 3.200000e+01 : f32
    %14 = vector.broadcast %cst_9 : f32 to vector<2x16x1xf32>
    %15 = arith.divf %13, %14 : vector<2x16x1xf32>
    %cst_10 = arith.constant 9.99999974E-6 : f32
    %16 = vector.broadcast %cst_10 : f32 to vector<2x16x1xf32>
    %17 = arith.addf %15, %16 : vector<2x16x1xf32>
    %18 = math.rsqrt %17 : vector<2x16x1xf32>
    %19 = vector.broadcast %18 : vector<2x16x1xf32> to vector<2x16x32xf32>
    %20 = arith.mulf %10, %19 : vector<2x16x32xf32>
    %21 = vector.shape_cast %0 : vector<1x32xf32> to vector<1x1x32xf32>
    %22 = vector.broadcast %21 : vector<1x1x32xf32> to vector<2x16x32xf32>
    %23 = arith.mulf %20, %22 : vector<2x16x32xf32>
    %24 = vector.shape_cast %1 : vector<1x32xf32> to vector<1x1x32xf32>
    %25 = vector.broadcast %24 : vector<1x1x32xf32> to vector<2x16x32xf32>
    %26 = arith.addf %23, %25 : vector<2x16x32xf32>
    %cst_11 = arith.constant 0.000000e+00 : f32
    %27 = vector.broadcast %cst_11 : f32 to vector<2x1x32xf32>
    %c0_12 = arith.constant 0 : index
    %c16 = arith.constant 16 : index
    %c0_13 = arith.constant 0 : index
    %28 = vector.load %arg6[%c0_12, %c16, %c0_13] : memref<2x17x32xf32, #tpu.memory_space<vmem>>, vector<2x1x32xf32>
    tpu.vector_store %arg6[%c0_12, %c16, %c0_13], %27 {strides = array<i32>} : memref<2x17x32xf32, #tpu.memory_space<vmem>>, vector<2x1x32xf32>,
    %c0_14 = arith.constant 0 : index
    %c0_15 = arith.constant 0 : index
    %c0_16 = arith.constant 0 : index
    %29 = vector.load %arg6[%c0_14, %c0_15, %c0_16] : memref<2x17x32xf32, #tpu.memory_space<vmem>>, vector<2x16x32xf32>
    tpu.vector_store %arg6[%c0_14, %c0_15, %c0_16], %26 {strides = array<i32>} : memref<2x17x32xf32, #tpu.memory_space<vmem>>, vector<2x16x32xf32>,
    %c0_17 = arith.constant 0 : index
    %c0_18 = arith.constant 0 : index
    %c0_19 = arith.constant 0 : index
    %30 = tpu.strided_load %arg6[%c0_17, %c0_18, %c0_19] {strides = array<i32: 1, 2, 1>} : memref<2x17x32xf32, #tpu.memory_space<vmem>>, vector<2x8x32xf32>
    %31 = vector.shape_cast %30 : vector<2x8x32xf32> to vector<16x32xf32>
    %c0_20 = arith.constant 0 : index
    %c0_21 = arith.constant 0 : index
    %c0_22 = arith.constant 0 : index
    %32 = vector.load %arg3[%c0_20, %c0_21, %c0_22] : memref<6x32x32xf32, #tpu.memory_space<vmem>>, vector<1x32x32xf32>
    %33 = vector.shape_cast %32 : vector<1x32x32xf32> to vector<32x32xf32>
    %cst_23 = arith.constant dense<0.000000e+00> : vector<16x32xf32>
    %34 = tpu.matmul %31, %33, %cst_23 {dimension_numbers = #tpu.dot_dimension_numbers<[1], [0], [0], [1], [0, 0, 1, 1], [], []>} : vector<16x32xf32>, vector<32x32xf32>, vector<16x32xf32> -> vector<16x32xf32>
    %35 = vector.broadcast %2 : vector<1x32xf32> to vector<16x32xf32>
    %36 = arith.addf %35, %34 : vector<16x32xf32>
    %c0_24 = arith.constant 0 : index
    %c1_25 = arith.constant 1 : index
    %c0_26 = arith.constant 0 : index
    %37 = tpu.strided_load %arg6[%c0_24, %c1_25, %c0_26] {strides = array<i32: 1, 2, 1>} : memref<2x17x32xf32, #tpu.memory_space<vmem>>, vector<2x8x32xf32>
    %38 = vector.shape_cast %37 : vector<2x8x32xf32> to vector<16x32xf32>
    %c1_27 = arith.constant 1 : index
    %c0_28 = arith.constant 0 : index
    %c0_29 = arith.constant 0 : index
    %39 = vector.load %arg3[%c1_27, %c0_28, %c0_29] : memref<6x32x32xf32, #tpu.memory_space<vmem>>, vector<1x32x32xf32>
    %40 = vector.shape_cast %39 : vector<1x32x32xf32> to vector<32x32xf32>
    %cst_30 = arith.constant dense<0.000000e+00> : vector<16x32xf32>
    %41 = tpu.matmul %38, %40, %cst_30 {dimension_numbers = #tpu.dot_dimension_numbers<[1], [0], [0], [1], [0, 0, 1, 1], [], []>} : vector<16x32xf32>, vector<32x32xf32>, vector<16x32xf32> -> vector<16x32xf32>
    %42 = arith.addf %36, %41 : vector<16x32xf32>
    %c0_31 = arith.constant 0 : index
    %c2_32 = arith.constant 2 : index
    %c0_33 = arith.constant 0 : index
    %43 = tpu.strided_load %arg6[%c0_31, %c2_32, %c0_33] {strides = array<i32: 1, 2, 1>} : memref<2x17x32xf32, #tpu.memory_space<vmem>>, vector<2x8x32xf32>
    %44 = vector.shape_cast %43 : vector<2x8x32xf32> to vector<16x32xf32>
    %c2_34 = arith.constant 2 : index
    %c0_35 = arith.constant 0 : index
    %c0_36 = arith.constant 0 : index
    %45 = vector.load %arg3[%c2_34, %c0_35, %c0_36] : memref<6x32x32xf32, #tpu.memory_space<vmem>>, vector<1x32x32xf32>
    %46 = vector.shape_cast %45 : vector<1x32x32xf32> to vector<32x32xf32>
    %cst_37 = arith.constant dense<0.000000e+00> : vector<16x32xf32>
    %47 = tpu.matmul %44, %46, %cst_37 {dimension_numbers = #tpu.dot_dimension_numbers<[1], [0], [0], [1], [0, 0, 1, 1], [], []>} : vector<16x32xf32>, vector<32x32xf32>, vector<16x32xf32> -> vector<16x32xf32>
    %48 = arith.addf %42, %47 : vector<16x32xf32>
    %cst_38 = arith.constant 0.000000e+00 : f32
    %49 = vector.broadcast %cst_38 : f32 to vector<2x9x32xf32>
    %c0_39 = arith.constant 0 : index
    %c8 = arith.constant 8 : index
    %c0_40 = arith.constant 0 : index
    %50 = vector.load %arg7[%c0_39, %c8, %c0_40] : memref<2x17x32xf32, #tpu.memory_space<vmem>>, vector<2x9x32xf32>
    tpu.vector_store %arg7[%c0_39, %c8, %c0_40], %49 {strides = array<i32>} : memref<2x17x32xf32, #tpu.memory_space<vmem>>, vector<2x9x32xf32>,
    %cst_41 = arith.constant 5.000000e-01 : f32
    %51 = vector.broadcast %cst_41 : f32 to vector<16x32xf32>
    %52 = arith.mulf %51, %48 : vector<16x32xf32>
    %53 = math.tanh %52 : vector<16x32xf32>
    %cst_42 = arith.constant 5.000000e-01 : f32
    %54 = vector.broadcast %cst_42 : f32 to vector<16x32xf32>
    %55 = arith.mulf %54, %53 : vector<16x32xf32>
    %cst_43 = arith.constant 5.000000e-01 : f32
    %56 = vector.broadcast %cst_43 : f32 to vector<16x32xf32>
    %57 = arith.addf %55, %56 : vector<16x32xf32>
    %58 = arith.mulf %48, %57 : vector<16x32xf32>
    %59 = vector.shape_cast %58 : vector<16x32xf32> to vector<2x8x32xf32>
    %c0_44 = arith.constant 0 : index
    %c0_45 = arith.constant 0 : index
    %c0_46 = arith.constant 0 : index
    %60 = vector.load %arg7[%c0_44, %c0_45, %c0_46] : memref<2x17x32xf32, #tpu.memory_space<vmem>>, vector<2x8x32xf32>
    tpu.vector_store %arg7[%c0_44, %c0_45, %c0_46], %59 {strides = array<i32>} : memref<2x17x32xf32, #tpu.memory_space<vmem>>, vector<2x8x32xf32>,
    %c0_47 = arith.constant 0 : index
    %c0_48 = arith.constant 0 : index
    %c0_49 = arith.constant 0 : index
    %61 = tpu.strided_load %arg7[%c0_47, %c0_48, %c0_49] {strides = array<i32: 1, 2, 1>} : memref<2x17x32xf32, #tpu.memory_space<vmem>>, vector<2x8x32xf32>
    %62 = vector.shape_cast %61 : vector<2x8x32xf32> to vector<16x32xf32>
    %c3_50 = arith.constant 3 : index
    %c0_51 = arith.constant 0 : index
    %c0_52 = arith.constant 0 : index
    %63 = vector.load %arg3[%c3_50, %c0_51, %c0_52] : memref<6x32x32xf32, #tpu.memory_space<vmem>>, vector<1x32x32xf32>
    %64 = vector.shape_cast %63 : vector<1x32x32xf32> to vector<32x32xf32>
    %cst_53 = arith.constant dense<0.000000e+00> : vector<16x32xf32>
    %65 = tpu.matmul %62, %64, %cst_53 {dimension_numbers = #tpu.dot_dimension_numbers<[1], [0], [0], [1], [0, 0, 1, 1], [], []>} : vector<16x32xf32>, vector<32x32xf32>, vector<16x32xf32> -> vector<16x32xf32>
    %66 = vector.broadcast %3 : vector<1x32xf32> to vector<16x32xf32>
    %67 = arith.addf %66, %65 : vector<16x32xf32>
    %c0_54 = arith.constant 0 : index
    %c1_55 = arith.constant 1 : index
    %c0_56 = arith.constant 0 : index
    %68 = tpu.strided_load %arg7[%c0_54, %c1_55, %c0_56] {strides = array<i32: 1, 2, 1>} : memref<2x17x32xf32, #tpu.memory_space<vmem>>, vector<2x8x32xf32>
    %69 = vector.shape_cast %68 : vector<2x8x32xf32> to vector<16x32xf32>
    %c4 = arith.constant 4 : index
    %c0_57 = arith.constant 0 : index
    %c0_58 = arith.constant 0 : index
    %70 = vector.load %arg3[%c4, %c0_57, %c0_58] : memref<6x32x32xf32, #tpu.memory_space<vmem>>, vector<1x32x32xf32>
    %71 = vector.shape_cast %70 : vector<1x32x32xf32> to vector<32x32xf32>
    %cst_59 = arith.constant dense<0.000000e+00> : vector<16x32xf32>
    %72 = tpu.matmul %69, %71, %cst_59 {dimension_numbers = #tpu.dot_dimension_numbers<[1], [0], [0], [1], [0, 0, 1, 1], [], []>} : vector<16x32xf32>, vector<32x32xf32>, vector<16x32xf32> -> vector<16x32xf32>
    %73 = arith.addf %67, %72 : vector<16x32xf32>
    %c0_60 = arith.constant 0 : index
    %c2_61 = arith.constant 2 : index
    %c0_62 = arith.constant 0 : index
    %74 = tpu.strided_load %arg7[%c0_60, %c2_61, %c0_62] {strides = array<i32: 1, 2, 1>} : memref<2x17x32xf32, #tpu.memory_space<vmem>>, vector<2x8x32xf32>
    %75 = vector.shape_cast %74 : vector<2x8x32xf32> to vector<16x32xf32>
    %c5 = arith.constant 5 : index
    %c0_63 = arith.constant 0 : index
    %c0_64 = arith.constant 0 : index
    %76 = vector.load %arg3[%c5, %c0_63, %c0_64] : memref<6x32x32xf32, #tpu.memory_space<vmem>>, vector<1x32x32xf32>
    %77 = vector.shape_cast %76 : vector<1x32x32xf32> to vector<32x32xf32>
    %cst_65 = arith.constant dense<0.000000e+00> : vector<16x32xf32>
    %78 = tpu.matmul %75, %77, %cst_65 {dimension_numbers = #tpu.dot_dimension_numbers<[1], [0], [0], [1], [0, 0, 1, 1], [], []>} : vector<16x32xf32>, vector<32x32xf32>, vector<16x32xf32> -> vector<16x32xf32>
    %79 = arith.addf %73, %78 : vector<16x32xf32>
    %cst_66 = arith.constant 5.000000e-01 : f32
    %80 = vector.broadcast %cst_66 : f32 to vector<16x32xf32>
    %81 = arith.mulf %80, %79 : vector<16x32xf32>
    %82 = math.tanh %81 : vector<16x32xf32>
    %cst_67 = arith.constant 5.000000e-01 : f32
    %83 = vector.broadcast %cst_67 : f32 to vector<16x32xf32>
    %84 = arith.mulf %83, %82 : vector<16x32xf32>
    %cst_68 = arith.constant 5.000000e-01 : f32
    %85 = vector.broadcast %cst_68 : f32 to vector<16x32xf32>
    %86 = arith.addf %84, %85 : vector<16x32xf32>
    %87 = arith.mulf %79, %86 : vector<16x32xf32>
    %88 = vector.shape_cast %87 : vector<16x32xf32> to vector<2x8x32xf32>
    %89 = vector.extract_strided_slice %88 {offsets = [0, 0, 0], sizes = [2, 3, 32], strides = [1, 1, 1]} : vector<2x8x32xf32> to vector<2x3x32xf32>
    %cst_69 = arith.constant dense<0.000000e+00> : vector<2x32xf32>
    %90 = vector.multi_reduction <add>, %89, %cst_69 [1] : vector<2x3x32xf32> to vector<2x32xf32>
    %cst_70 = arith.constant 0.333333343 : f32
    %91 = vector.broadcast %cst_70 : f32 to vector<2x32xf32>
    %92 = arith.mulf %90, %91 : vector<2x32xf32>
    %c0_71 = arith.constant 0 : index
    %c0_72 = arith.constant 0 : index
    %93 = vector.load %arg4[%c0_71, %c0_72] : memref<33x128xf32, #tpu.memory_space<vmem>>, vector<32x128xf32>
    %c32 = arith.constant 32 : index
    %c0_73 = arith.constant 0 : index
    %94 = vector.load %arg4[%c32, %c0_73] : memref<33x128xf32, #tpu.memory_space<vmem>>, vector<1x128xf32>
    %cst_74 = arith.constant dense<0.000000e+00> : vector<2x128xf32>
    %95 = tpu.matmul %92, %93, %cst_74 {dimension_numbers = #tpu.dot_dimension_numbers<[1], [0], [0], [1], [0, 0, 1, 1], [], []>} : vector<2x32xf32>, vector<32x128xf32>, vector<2x128xf32> -> vector<2x128xf32>
    %96 = vector.broadcast %94 : vector<1x128xf32> to vector<2x128xf32>
    %97 = arith.addf %95, %96 : vector<2x128xf32>
    %c0_75 = arith.constant 0 : index
    %c0_76 = arith.constant 0 : index
    %98 = vector.load %arg5[%c0_75, %c0_76] : memref<2x128xf32, #tpu.memory_space<vmem>>, vector<2x128xf32>
    tpu.vector_store %arg5[%c0_75, %c0_76], %97 {strides = array<i32>} : memref<2x128xf32, #tpu.memory_space<vmem>>, vector<2x128xf32>,
    return
  }
  func.func @transform_0(%arg0: i32) -> (i32, i32, i32) {
    %c0_i32 = arith.constant 0 : i32
    %c0_i32_0 = arith.constant 0 : i32
    %c0_i32_1 = arith.constant 0 : i32
    return %arg0, %c0_i32, %c0_i32_0 : i32, i32, i32
  }
  func.func @transform_1(%arg0: i32) -> (i32, i32) {
    %c0_i32 = arith.constant 0 : i32
    %c0_i32_0 = arith.constant 0 : i32
    %c0_i32_1 = arith.constant 0 : i32
    return %c0_i32, %c0_i32_0 : i32, i32
  }
  func.func @transform_2(%arg0: i32) -> (i32, i32, i32) {
    %c0_i32 = arith.constant 0 : i32
    %c0_i32_0 = arith.constant 0 : i32
    %c0_i32_1 = arith.constant 0 : i32
    %c0_i32_2 = arith.constant 0 : i32
    return %c0_i32, %c0_i32_0, %c0_i32_1 : i32, i32, i32
  }
  func.func @transform_3(%arg0: i32) -> (i32, i32) {
    %c0_i32 = arith.constant 0 : i32
    %c0_i32_0 = arith.constant 0 : i32
    %c0_i32_1 = arith.constant 0 : i32
    return %c0_i32, %c0_i32_0 : i32, i32
  }
  func.func @transform_4(%arg0: i32) -> (i32, i32) {
    %c0_i32 = arith.constant 0 : i32
    %c0_i32_0 = arith.constant 0 : i32
    return %arg0, %c0_i32 : i32, i32
  }
}

</mosaic_0001>

<bundles_post_ra>
// kernel: tpu_custom_call.1
= control target key start
LH: loop header
LB: loop body
LE: loop exit
PB: predicated region body
PF: predicated region fallthrough
CT: control target
= control target key end

     0   :  { %9 = vsyncpa [#allocation5], 0  ;;  %s1369_s0 = inlined_call_operand.hbm [shape: f32[2,16,32], index: 0, kind: input, shape index: {}]   ;;  %s1370_s1 = inlined_call_operand.hbm [shape: f32[4,32], index: 1, kind: input, shape index: {}]   ;;  %s1371_s2 = inlined_call_operand.hbm [shape: f32[6,32,32], index: 2, kind: input, shape index: {}]   ;;  %s1372_s3 = inlined_call_operand.hbm [shape: f32[33,128], index: 3, kind: input, shape index: {}]   ;;  %s1373_s4 = inlined_call_operand.hbm [shape: f32[2,128], index: 4, kind: output, shape index: {}]  }
   0x1   :  { %10 = vsyncpa [#allocation8], 0 }
   0x2   :  { %11 = vsyncpa [#allocation11], 0 }
   0x3   :  { %12 = vsyncpa [#allocation6], 0  ;;  %s1205_s15 = smov [#allocation7]   ;;  %s1206_s17 = smov [#allocation4]  }
   0x4   :  { %s31_s16 = sshll.u32 %s1205_s15, 4  ;;  %s18_s18 = sshll.u32 %s1206_s17, 4  ;;  %s32_s16 = int_to_ptr.vmem [resolvable:$true] %s31_s16  ;;  %s1240_s18 = int_to_ptr.vmem [resolvable:$true] %s18_s18 }
   0x5   :  { %s1087_s21 = scalar_lea.hbm %s1370_s1, 64 }
   0x6   :  { %p1088_p0 = scmp.ne.s32.totalorder %s1370_s1, %s1087_s21  ;;  %p1091_p1 = scmp.lt.u32.totalorder %s1087_s21, %s1370_s1 }
   0x8   :  { %p1093_p2 = pnand %p1091_p1, %p1088_p0 }
   0xa   :  { %1096 = shalt.err (!%p1093_p2)
}
   0xb   :  { %s1097_s26 = scalar_lea.vmem %s32_s16, 64  ;;  %p1102_p4 = scmp.lt.s32.totalorder %s32_s16, %s32_s16 }
   0xc   :  { %p1098_p3 = scmp.ne.s32.totalorder %s32_s16, %s1097_s26  ;;  %p1103_p5 = scmp.lt.s32.totalorder %s1097_s26, %s1097_s26 }
   0xe   :  { %p1104_p6 = por %p1103_p5, %p1102_p4 }
  0x10   :  { %p1105_p7 = pnand %p1104_p6, %p1098_p3 }
  0x12   :  { %1108 = shalt.err (!%p1105_p7)
}
  0x13   :  { %34 = dma.hbm_to_vmem [thread:$0]  %s1370_s1, 64, %s32_s16, [#allocation8]  }
  0x14   :  { %s1109_s5 = scalar_lea.hbm %s1369_s0, 512 }
  0x15   :  { %p1110_p8 = scmp.ne.s32.totalorder %s1369_s0, %s1109_s5  ;;  %p1113_p9 = scmp.lt.u32.totalorder %s1109_s5, %s1369_s0 }
  0x17   :  { %p1115_p10 = pnand %p1113_p9, %p1110_p8 }
  0x19   :  { %1118 = shalt.err (!%p1115_p10)
}
  0x1a   :  { %s1119_s10 = scalar_lea.vmem %s1240_s18, 512  ;;  %p1124_p12 = scmp.lt.s32.totalorder %s1240_s18, %s1240_s18 }
  0x1b   :  { %p1120_p11 = scmp.ne.s32.totalorder %s1240_s18, %s1119_s10  ;;  %p1125_p13 = scmp.lt.s32.totalorder %s1119_s10, %s1119_s10 }
  0x1d   :  { %p1126_p0 = por %p1125_p13, %p1124_p12 }
  0x1f   :  { %p1127_p1 = pnand %p1126_p0, %p1120_p11 }
  0x21   :  { %1130 = shalt.err (!%p1127_p1)
}
  0x22   :  { %s1207_s1 = smov 128   ;;  %s1208_s11 = smov 8  }
  0x23   :  { %24 = dma.hbm_to_vmem [thread:$0]  %s1369_s0, 512, %s1240_s18, [#allocation5], %s1207_s1, %s1207_s1, %s1208_s11  }
  0x24   :  { %s1209_s14 = smov [#allocation9]   ;;  %s1210_s16 = smov [#allocation10]  }
  0x25   :  { %s40_s15 = sshll.u32 %s1209_s14, 4  ;;  %s52_s17 = sshll.u32 %s1210_s16, 4  ;;  %s41_s15 = int_to_ptr.vmem [resolvable:$true] %s40_s15  ;;  %s1274_s17 = int_to_ptr.vmem [resolvable:$true] %s52_s17 }
  0x26   :  { %s1131_s21 = scalar_lea.hbm %s1371_s2, 3072 }
  0x27   :  { %p1132_p2 = scmp.ne.s32.totalorder %s1371_s2, %s1131_s21  ;;  %p1135_p3 = scmp.lt.u32.totalorder %s1131_s21, %s1371_s2 }
  0x29   :  { %p1137_p4 = pnand %p1135_p3, %p1132_p2 }
  0x2b   :  { %1140 = shalt.err (!%p1137_p4)
}
  0x2c   :  { %s1141_s0 = scalar_lea.vmem %s41_s15, 3072  ;;  %p1146_p6 = scmp.lt.s32.totalorder %s41_s15, %s41_s15 }
  0x2d   :  { %p1142_p5 = scmp.ne.s32.totalorder %s41_s15, %s1141_s0  ;;  %p1147_p7 = scmp.lt.s32.totalorder %s1141_s0, %s1141_s0 }
  0x2f   :  { %p1148_p8 = por %p1147_p7, %p1146_p6 }
  0x31   :  { %p1149_p9 = pnand %p1148_p8, %p1142_p5 }
  0x33   :  { %1152 = shalt.err (!%p1149_p9)
}
  0x34   :  { %46 = dma.hbm_to_vmem [thread:$0]  %s1371_s2, 3072, %s41_s15, [#allocation8], %s1207_s1, %s1207_s1, %s1208_s11  }
  0x35   :  { %s1153_s29 = scalar_lea.hbm %s1372_s3, 640 }
  0x36   :  { %p1154_p10 = scmp.ne.s32.totalorder %s1372_s3, %s1153_s29  ;;  %p1157_p11 = scmp.lt.u32.totalorder %s1153_s29, %s1372_s3 }
  0x38   :  { %p1159_p12 = pnand %p1157_p11, %p1154_p10 }
  0x3a   :  { %1162 = shalt.err (!%p1159_p12)
}
  0x3b   :  { %s1163_s8 = scalar_lea.vmem %s1274_s17, 640  ;;  %p1168_p0 = scmp.lt.s32.totalorder %s1274_s17, %s1274_s17 }
  0x3c   :  { %p1164_p13 = scmp.ne.s32.totalorder %s1274_s17, %s1163_s8  ;;  %p1169_p1 = scmp.lt.s32.totalorder %s1163_s8, %s1163_s8 }
  0x3e   :  { %p1170_p2 = por %p1169_p1, %p1168_p0 }
  0x40   :  { %p1171_p3 = pnand %p1170_p2, %p1164_p13 }
  0x42   :  { %1174 = shalt.err (!%p1171_p3)
}
  0x43   :  { %58 = dma.hbm_to_vmem [thread:$0]  %s1372_s3, 640, %s1274_s17, [#allocation11], %s1207_s1, %s1207_s1, %s1208_s11  }
  0x44   :  { %1197 = dma.done.wait [#allocation5], 512  }
  0x45   :  { %1198 = vsyncadd [#allocation5], 4294966784 }
  0x46   :  { %1199 = dma.done.wait [#allocation8], 3136  }
  0x47   :  { %1200 = vsyncadd [#allocation8], 4294964160 }
  0x48   :  { %1201 = dma.done.wait [#allocation11], 640  }
  0x49   :  { %1202 = vsyncadd [#allocation11], 4294966656  ;;  %vm79_vm0 = vcmask 261120   ;;  %v75_v0 = vld [vmem:[#allocation4] sm:$0xff]  ;;  %v77_v1 = vld [vmem:[#allocation4 + $0x10] sm:$0xff]  ;;  %vm149_vm1 = vcmask 253952  }
  0x4a   :  { %v76_v2 = vld [vmem:[#allocation4 + $0x8] sm:$0xff]  ;;  %v80_v3 = vsel %vm79_vm0, %v75_v0, 0.0  ;;  %v86_v4 = vsel %vm79_vm0, %v77_v1, 0.0  ;;  %v78_v5 = vld [vmem:[#allocation4 + $0x18] sm:$0xff]  ;;  %v1211_v28 = vmov 0.0   ;;  %vm1213_vm2 = vmmov 0  }
  0x4b   :  { %81 = vadd.xlane.f32.xlu0 %v80_v3  ;;  %87 = vadd.xlane.f32.xlu1 %v86_v4  ;;  %v83_v6 = vsel %vm79_vm0, %v76_v2, 0.0  ;;  %v89_v7 = vsel %vm79_vm0, %v78_v5, 0.0  ;;  %150 = vst.msk [vmem:[#allocation2 + $0x10] sm:$0x1] %vm149_vm1, %v1211_v28  ;;  %151 = vst.msk [vmem:[#allocation2 + $0x28] sm:$0x1] %vm149_vm1, %v1211_v28 }
  0x4c   :  { %434 = vst.msk [vmem:[#allocation3 + $0x8] sm:$0xff] %vm79_vm0, %v1211_v28  ;;  %436 = vst.msk [vmem:[#allocation3 + $0x20] sm:$0xff] %vm79_vm0, %v1211_v28  ;;  %v159_v29 = vld [vmem:[#allocation9] sm:$0xff]  ;;  %v160_v30 = vld [vmem:[#allocation9 + $0x8] sm:$0xff]  ;;  %vm739_vm3 = vcmask 256000   ;;  %vm767_vm4 = vcmask 1041409  }
  0x4d   :  { %435 = vst.msk [vmem:[#allocation3 + $0x10] sm:$0x1] %vm149_vm1, %v1211_v28  ;;  %437 = vst.msk [vmem:[#allocation3 + $0x28] sm:$0x1] %vm149_vm1, %v1211_v28  ;;  %v995_v31 = vpack.c.bf16 %v160_v30, %v159_v29  ;;  %v161_v32 = vld [vmem:[#allocation9 + $0x10] sm:$0xff]  ;;  %v162_v33 = vld [vmem:[#allocation9 + $0x18] sm:$0xff] }
  0x4e   :  { %v999_v34 = vpack.c.bf16 %v162_v33, %v161_v32  ;;  %v255_v35 = vld [vmem:[#allocation9 + $0x20] sm:$0xff]  ;;  %v256_v36 = vld [vmem:[#allocation9 + $0x28] sm:$0xff]  ;;  %v859_v51 = vld [vmem:[#allocation7] ss:$0 sm:$0xff]  ;;  %s1214_s3 = smov [#allocation12]  }
  0x4f   :  { %84 = vadd.xlane.f32.xlu0 %v83_v6  ;;  %90 = vadd.xlane.f32.xlu1 %v89_v7  ;;  %v1003_v37 = vpack.c.bf16 %v256_v36, %v255_v35  ;;  %v860_v53 = vld [vmem:[#allocation7 + $0x1] ss:$0 sm:$0xff]  ;;  %v863_v29 = vld [vmem:[#allocation7 + $0x2] ss:$0 sm:$0xff]  ;;  %s848_s10 = sshll.u32 %s1214_s3, 4  ;;  %s849_s10 = int_to_ptr.vmem [resolvable:$true] %s848_s10 }
  0x50   :  { %996 = vmatprep.subr.bf16.mxu0 %v995_v31  ;;  %v258_v6 = vld [vmem:[#allocation9 + $0x38] sm:$0xff]  ;;  %s1175_s1 = scalar_lea.vmem %s849_s10, 32  ;;  %p1180_p5 = scmp.lt.s32.totalorder %s849_s10, %s849_s10 }
  0x51   :  { %998 = vmatpush3.bf16.msra.mxu0 %v995_v31  ;;  %p1176_p4 = scmp.ne.s32.totalorder %s849_s10, %s1175_s1  ;;  %p1181_p6 = scmp.lt.s32.totalorder %s1175_s1, %s1175_s1 }
  0x52   :  { %1000 = vmatprep.subr.bf16.mxu0 %v999_v34 }
  0x53   :  { %p1182_p7 = por %p1181_p6, %p1180_p5 }
  0x55   :  { %1002 = vmatpush3.bf16.msra.mxu0 %v999_v34  ;;  %p1183_p8 = pnand %p1182_p7, %p1176_p4 }
  0x56   :  { %1004 = vmatprep.subr.bf16.mxu0 %v1003_v37 }
  0xd8   :  { %v82_v8 = vpop.xlane.xlu0 %81  ;;  %v88_v9 = vpop.xlane.xlu1 %87 }
  0xd9   :  { %v93_v10 = vmul.f32 0.03125, %v82_v8  ;;  %v95_v11 = vmul.f32 0.03125, %v88_v9  ;;  %v347_v9 = vld [vmem:[#allocation9 + $0x40] sm:$0xff] }
  0xdb   :  { %v97_v12 = vsub.f32 %v75_v0, %v93_v10  ;;  %v1315_v13 = vsub.f32 %v77_v1, %v95_v11  ;;  %v348_v10 = vld [vmem:[#allocation9 + $0x48] sm:$0xff] }
  0xdc   :  { %v85_v14 = vpop.xlane.xlu0 %84  ;;  %v91_v15 = vpop.xlane.xlu1 %90 }
  0xdd   :  { %v94_v16 = vmul.f32 0.03125, %v85_v14  ;;  %v96_v17 = vmul.f32 0.03125, %v91_v15  ;;  %v101_v18 = vmul.f32 %v97_v12, %v97_v12  ;;  %v103_v19 = vmul.f32 %v1315_v13, %v1315_v13  ;;  %v350_v14 = vld [vmem:[#allocation9 + $0x58] sm:$0xff] }
  0xdf   :  { %v98_v20 = vsub.f32 %v76_v2, %v94_v16  ;;  %v1319_v21 = vsub.f32 %v78_v5, %v96_v17  ;;  %v105_v22 = vsel %vm79_vm0, %v101_v18, 0.0  ;;  %v111_v23 = vsel %vm79_vm0, %v103_v19, 0.0  ;;  %v257_v5 = vld [vmem:[#allocation9 + $0x30] sm:$0xff]  ;;  %v454_v19 = vld [vmem:[#allocation9 + $0x60] sm:$0xff] }
  0xe0   :  { %106 = vadd.xlane.f32.xlu0 %v105_v22  ;;  %v1007_v7 = vpack.c.bf16 %v258_v6, %v257_v5  ;;  %v456_v22 = vld [vmem:[#allocation9 + $0x70] sm:$0xff] }
  0xe1   :  { %v102_v24 = vmul.f32 %v98_v20, %v98_v20  ;;  %v104_v25 = vmul.f32 %v1319_v21, %v1319_v21 }
  0xe3   :  { %v108_v26 = vsel %vm79_vm0, %v102_v24, 0.0  ;;  %v114_v27 = vsel %vm79_vm0, %v104_v25, 0.0  ;;  %v550_v25 = vld [vmem:[#allocation9 + $0x80] sm:$0xff] }
  0xe4   :  { %112 = vadd.xlane.f32.xlu0 %v111_v23  ;;  %109 = vadd.xlane.f32.xlu1 %v108_v26  ;;  %v457_v23 = vld [vmem:[#allocation9 + $0x78] sm:$0xff]  ;;  %v551_v26 = vld [vmem:[#allocation9 + $0x88] sm:$0xff] }
  0xe5   :  { %v1023_v24 = vpack.c.bf16 %v457_v23, %v456_v22 }
  0xe8   :  { %115 = vadd.xlane.f32.xlu1 %v114_v27  ;;  %v1027_v27 = vpack.c.bf16 %v551_v26, %v550_v25 }
 0x16d   :  { %v107_v38 = vpop.xlane.xlu0 %106 }
 0x16e   :  { %v117_v39 = vmul.f32 0.03125, %v107_v38 }
 0x170   :  { %v121_v40 = vadd.f32 1e-05, %v117_v39 }
 0x171   :  { %v110_v41 = vpop.xlane.xlu1 %109  ;;  %v113_v42 = vpop.xlane.xlu0 %112 }
 0x172   :  { %1071 = vrsqrt.f32 %v121_v40  ;;  %v118_v43 = vmul.f32 0.03125, %v110_v41  ;;  %v119_v44 = vmul.f32 0.03125, %v113_v42 }
 0x174   :  { %v122_v45 = vadd.f32 1e-05, %v118_v43  ;;  %v123_v46 = vadd.f32 1e-05, %v119_v44  ;;  %v552_v44 = vld [vmem:[#allocation9 + $0x90] sm:$0xff] }
 0x175   :  { %v116_v47 = vpop.xlane.xlu1 %115 }
 0x176   :  { %1073 = vrsqrt.f32 %v122_v45  ;;  %v120_v48 = vmul.f32 0.03125, %v116_v47  ;;  %v553_v45 = vld [vmem:[#allocation9 + $0x98] sm:$0xff] }
 0x177   :  { %1075 = vrsqrt.f32 %v123_v46  ;;  %v1031_v47 = vpack.c.bf16 %v553_v45, %v552_v44 }
 0x178   :  { %v124_v49 = vadd.f32 1e-05, %v120_v48 }
 0x17a   :  { %1077 = vrsqrt.f32 %v124_v49  ;;  %v642_v49 = vld [vmem:[#allocation9 + $0xa0] sm:$0xff] }
 0x17c   :  { %v1072_v50 = vpop.eup %1071 }
 0x17d   :  { %v129_v52 = vmul.f32 %v1072_v50, %v97_v12  ;;  %v1011_v12 = vpack.c.bf16 %v348_v10, %v347_v9  ;;  %v643_v50 = vld [vmem:[#allocation9 + $0xa8] sm:$0xff] }
 0x17f   :  { %v137_v54 = vmul.f32 %v859_v51, %v129_v52  ;;  %v1035_v52 = vpack.c.bf16 %v643_v50, %v642_v49 }
 0x180   :  { %v1074_v55 = vpop.eup %1073 }
 0x181   :  { %v1076_v56 = vpop.eup %1075  ;;  %v145_v57 = vadd.f32 %v860_v53, %v137_v54  ;;  %v130_v58 = vmul.f32 %v1074_v55, %v98_v20  ;;  %v455_v20 = vld [vmem:[#allocation9 + $0x68] sm:$0xff]  ;;  %v645_v54 = vld [vmem:[#allocation9 + $0xb8] sm:$0xff] }
 0x182   :  { %v131_v59 = vmul.f32 %v1076_v56, %v1315_v13  ;;  %v349_v13 = vld [vmem:[#allocation9 + $0x50] sm:$0xff] }
 0x183   :  { %152 = vst.msk [vmem:[#allocation2] sm:$0xff] %vm79_vm0, %v145_v57  ;;  %v138_v60 = vmul.f32 %v859_v51, %v130_v58  ;;  %v1015_v15 = vpack.c.bf16 %v350_v14, %v349_v13 }
 0x184   :  { %v1078_v61 = vpop.eup %1077  ;;  %v139_v62 = vmul.f32 %v859_v51, %v131_v59  ;;  %v756_v59 = vld [vmem:[#allocation10] sm:$0xff] }
 0x185   :  { %v146_v63 = vadd.f32 %v860_v53, %v138_v60  ;;  %v132_v0 = vmul.f32 %v1078_v61, %v1319_v21  ;;  %v1019_v21 = vpack.c.bf16 %v455_v20, %v454_v19  ;;  %v757_v60 = vld [vmem:[#allocation10 + $0x8] sm:$0xff] }
 0x186   :  { %v147_v1 = vadd.f32 %v860_v53, %v139_v62  ;;  %v1044_v61 = vpack.c.bf16 %v757_v60, %v756_v59  ;;  %v1212_v62 = vmov 0.0|0.0  }
 0x187   :  { %153 = vst.msk [vmem:[#allocation2 + $0x8] sm:$0xff] %vm79_vm0, %v146_v63  ;;  %v140_v2 = vmul.f32 %v859_v51, %v132_v0  ;;  %1020 = vmatprep.subr.bf16.mxu1 %v1019_v21  ;;  %v758_v63 = vld [vmem:[#allocation10 + $0x10] sm:$0xff]  ;;  %v759_v0 = vld [vmem:[#allocation10 + $0x18] sm:$0xff] }
 0x188   :  { %154 = vst.msk [vmem:[#allocation2 + $0x18] sm:$0xff] %vm79_vm0, %v147_v1  ;;  %1022 = vmatpush3.bf16.msra.mxu1 %v1019_v21  ;;  %v1047_v1 = vpack.c.bf16 %v759_v0, %v758_v63 }
 0x189   :  { %v148_v3 = vadd.f32 %v860_v53, %v140_v2  ;;  %1024 = vmatprep.subr.bf16.mxu1 %v1023_v24  ;;  %v644_v53 = vld [vmem:[#allocation9 + $0xb0] sm:$0xff]  ;;  %v870_v2 = vld [vmem:[#allocation7 + $0x3] ss:$0 sm:$0xff] }
 0x18a   :  { %v1039_v55 = vpack.c.bf16 %v645_v54, %v644_v53 }
 0x18b   :  { %155 = vst.msk [vmem:[#allocation2 + $0x20] sm:$0xff] %vm79_vm0, %v148_v3 }
 0x18c   :  { %1026 = vmatpush3.bf16.msra.mxu1 %v1023_v24 }
 0x18d   :  { %1028 = vmatprep.subr.bf16.mxu1 %v1027_v27 }
 0x18e   :  { %v156_v4 = vld [vmem:[#allocation2] ss:$2 sm:$0xff]  ;;  %v251_v11 = vld [vmem:[#allocation2 + $0x1] ss:$2 sm:$0xff] }
 0x18f   :  { %926 = vmatprep.mubr.msk.f32.mxu0 %vm79_vm0, %v156_v4  ;;  %v343_v17 = vld [vmem:[#allocation2 + $0x2] ss:$2 sm:$0xff] }
 0x192   :  { %v158_v8 = vld [vmem:[#allocation2 + $0x18] ss:$2 sm:$0xff]  ;;  %v253_v16 = vld [vmem:[#allocation2 + $0x19] ss:$2 sm:$0xff] }
 0x193   :  { %927 = vmatmul.mubr.msk.f32.vlgmr.msra.gmra.mrb[0].mxu0 %vm79_vm0, %v158_v8  ;;  %v345_v18 = vld [vmem:[#allocation2 + $0x1a] ss:$2 sm:$0xff] }
 0x194   :  { %1006 = vmatpush3.bf16.msra.mxu0 %v1003_v37  ;;  %937 = vmatprep.mubr.msk.f32.mxu0 %vm79_vm0, %v251_v11 }
 0x195   :  { %1008 = vmatprep.subr.bf16.mxu0 %v1007_v7 }
 0x198   :  { %1010 = vmatpush3.bf16.msra.mxu0 %v1007_v7 }
 0x199   :  { %1012 = vmatprep.subr.bf16.mxu0 %v1011_v12 }
 0x19b   :  { %938 = vmatmul.mubr.msk.f32.vlgmr.msra.gmra.mrb[0].mxu0 %vm79_vm0, %v253_v16 }
 0x19c   :  { %1014 = vmatpush3.bf16.msra.mxu0 %v1011_v12  ;;  %948 = vmatprep.mubr.msk.f32.mxu0 %vm79_vm0, %v343_v17 }
 0x19d   :  { %1016 = vmatprep.subr.bf16.mxu0 %v1015_v15 }
 0x1a0   :  { %1018 = vmatpush3.bf16.msra.mxu0 %v1015_v15 }
 0x1a1   :  { %1043 = vmatprep.subr.bf16.mxu0 %v1212_v62 }
 0x1a3   :  { %949 = vmatmul.mubr.msk.f32.vlgmr.msra.gmra.mrb[0].mxu0 %vm79_vm0, %v345_v18 }
 0x1a4   :  { %1045 = vmatpush3.bf16.msra.mxu0 %v1044_v61  ;;  %992 = vmatprep.mubr.msk.f32.mxu0 %vm1213_vm2, %v1211_v28 }
 0x1a5   :  { %1046 = vmatprep.subr.bf16.mxu0 %v1212_v62 }
 0x1a8   :  { %1048 = vmatpush3.bf16.msra.mxu0 %v1047_v1 }
 0x276   :  { %v950_v30 = vpop.f32.mrb[0].mxu0 }
 0x277   :  { %v1049_v31 = vadd.f32 %v950_v30, %v863_v29  ;;  %v423_v32 = vpop.f32.mrb[1].mxu0 }
 0x278   :  { %v1050_v33 = vadd.f32 %v863_v29, %v423_v32 }
 0x279   :  { %v439_v34 = vmul.f32 0.5, %v1049_v31 }
 0x27a   :  { %v438_v35 = vmul.f32 0.5, %v1050_v33 }
 0x27b   :  { %1079 = vtanh.f32 %v439_v34  ;;  %v875_v34 = vld [vmem:[#allocation10 + $0x20] ss:$0 sm:$0xff] }
 0x27c   :  { %1081 = vtanh.f32 %v438_v35 }
 0x285   :  { %v1080_v36 = vpop.eup %1079 }
 0x286   :  { %v1082_v37 = vpop.eup %1081  ;;  %v443_v38 = vmul.f32 0.5, %v1080_v36 }
 0x287   :  { %v442_v39 = vmul.f32 0.5, %v1082_v37 }
 0x288   :  { %v445_v40 = vadd.f32 0.5, %v443_v38 }
 0x289   :  { %v444_v41 = vadd.f32 0.5, %v442_v39 }
 0x28a   :  { %v447_v42 = vmul.f32 %v1049_v31, %v445_v40 }
 0x28b   :  { %v446_v43 = vmul.f32 %v1050_v33, %v444_v41 }
 0x28c   :  { %449 = vst.msk [vmem:[#allocation3 + $0x18] sm:$0xff] %vm79_vm0, %v447_v42 }
 0x28d   :  { %448 = vst.msk [vmem:[#allocation3] sm:$0xff] %vm79_vm0, %v446_v43 }
 0x293   :  { %v452_v48 = vld [vmem:[#allocation3 + $0x18] ss:$2 sm:$0xff]  ;;  %v548_v56 = vld [vmem:[#allocation3 + $0x19] ss:$2 sm:$0xff] }
 0x294   :  { %v450_v46 = vld [vmem:[#allocation3] ss:$2 sm:$0xff]  ;;  %v546_v51 = vld [vmem:[#allocation3 + $0x1] ss:$2 sm:$0xff] }
 0x295   :  { %959 = vmatprep.mubr.msk.f32.mxu1 %vm79_vm0, %v450_v46  ;;  %v638_v57 = vld [vmem:[#allocation3 + $0x2] ss:$2 sm:$0xff] }
 0x296   :  { %960 = vmatmul.mubr.msk.f32.vlgmr.msra.gmra.mrb[0].mxu1 %vm79_vm0, %v452_v48  ;;  %v640_v58 = vld [vmem:[#allocation3 + $0x1a] ss:$2 sm:$0xff] }
 0x297   :  { %1030 = vmatpush3.bf16.msra.mxu1 %v1027_v27  ;;  %970 = vmatprep.mubr.msk.f32.mxu1 %vm79_vm0, %v546_v51 }
 0x298   :  { %1032 = vmatprep.subr.bf16.mxu1 %v1031_v47 }
 0x29b   :  { %1034 = vmatpush3.bf16.msra.mxu1 %v1031_v47 }
 0x29c   :  { %1036 = vmatprep.subr.bf16.mxu1 %v1035_v52 }
 0x29e   :  { %971 = vmatmul.mubr.msk.f32.vlgmr.msra.gmra.mrb[0].mxu1 %vm79_vm0, %v548_v56 }
 0x29f   :  { %1038 = vmatpush3.bf16.msra.mxu1 %v1035_v52  ;;  %981 = vmatprep.mubr.msk.f32.mxu1 %vm79_vm0, %v638_v57 }
 0x2a0   :  { %1040 = vmatprep.subr.bf16.mxu1 %v1039_v55 }
 0x2a3   :  { %1042 = vmatpush3.bf16.msra.mxu1 %v1039_v55 }
 0x2a6   :  { %982 = vmatmul.mubr.msk.f32.vlgmr.msra.gmra.mrb[0].mxu1 %vm79_vm0, %v640_v58 }
 0x379   :  { %v983_v3 = vpop.f32.mrb[0].mxu1 }
 0x37a   :  { %v1051_v4 = vadd.f32 %v983_v3, %v870_v2  ;;  %v718_v5 = vpop.f32.mrb[1].mxu1 }
 0x37b   :  { %v1052_v6 = vadd.f32 %v870_v2, %v718_v5 }
 0x37c   :  { %v730_v7 = vmul.f32 0.5, %v1051_v4 }
 0x37d   :  { %v729_v8 = vmul.f32 0.5, %v1052_v6 }
 0x37e   :  { %1083 = vtanh.f32 %v730_v7 }
 0x37f   :  { %1085 = vtanh.f32 %v729_v8 }
 0x388   :  { %v1084_v9 = vpop.eup %1083 }
 0x389   :  { %v1086_v10 = vpop.eup %1085  ;;  %v734_v11 = vmul.f32 0.5, %v1084_v9 }
 0x38a   :  { %v733_v12 = vmul.f32 0.5, %v1086_v10 }
 0x38b   :  { %v736_v13 = vadd.f32 0.5, %v734_v11 }
 0x38c   :  { %v735_v14 = vadd.f32 0.5, %v733_v12 }
 0x38d   :  { %v738_v15 = vmul.f32 %v1051_v4, %v736_v13 }
 0x38e   :  { %v737_v16 = vmul.f32 %v1052_v6, %v735_v14 }
 0x38f   :  { %v747_v17 = vsel %vm739_vm3, %v738_v15, 0.0 }
 0x390   :  { %v748_v28 = vrot.slane %v747_v17, 4  ;;  %v740_v18 = vsel %vm739_vm3, %v737_v16, 0.0 }
 0x391   :  { %v741_v19 = vrot.slane %v740_v18, 4 }
 0x392   :  { %v749_v20 = vadd.f32 %v748_v28, %v747_v17 }
 0x393   :  { %v742_v21 = vadd.f32 %v741_v19, %v740_v18 }
 0x394   :  { %v750_v22 = vrot.slane %v749_v20, 2 }
 0x395   :  { %v743_v23 = vrot.slane %v742_v21, 2 }
 0x396   :  { %v751_v24 = vadd.f32 %v750_v22, %v749_v20 }
 0x397   :  { %v744_v25 = vadd.f32 %v743_v23, %v742_v21 }
 0x398   :  { %v752_v26 = vrot.slane %v751_v24, 1 }
 0x399   :  { %v745_v27 = vrot.slane %v744_v25, 1 }
 0x39a   :  { %v753_v29 = vadd.f32 %v752_v26, %v751_v24 }
 0x39b   :  { %v746_v30 = vadd.f32 %v745_v27, %v744_v25 }
 0x39c   :  { %v755_v31 = vmul.f32 0.33333334, %v753_v29 }
 0x39d   :  { %v754_v32 = vmul.f32 0.33333334, %v746_v30 }
 0x39f   :  { %v768_v33 = vsel %vm767_vm4, %v755_v31, %v754_v32 }
 0x3a0   :  { %993 = vmatmul.mubr.msk.f32.vlgmr.msra.gmra.mrb[2].mxu0 %vm79_vm0, %v768_v33 }
 0x473   :  { %v837_v35 = vpop.f32.mrb[2].mxu0 }
 0x474   :  { %v838_v36 = vadd.f32 %v875_v34, %v837_v35  ;;  %v994_v37 = vpop.f32.mrb[3].mxu0 }
 0x476   :  { %841 = vst [vmem:[#allocation12] sm:$0x3] %v838_v36 }
 0x477   :  { %1186 = shalt.err (!%p1183_p8)
}
 0x478   :  { %s1187_s13 = scalar_lea.hbm %s1373_s4, 32 }
 0x479   :  { %p1188_p9 = scmp.ne.s32.totalorder %s1373_s4, %s1187_s13  ;;  %p1191_p10 = scmp.lt.u32.totalorder %s1187_s13, %s1373_s4 }
 0x47b   :  { %p1193_p11 = pnand %p1191_p10, %p1188_p9 }
 0x47d   :  { %1196 = shalt.err (!%p1193_p11)
}
 0x47e   :  { %851 = dma.vmem_to_hbm [thread:$0]  %s849_s10, 32, %s1373_s4, [#allocation6]  }
 0x47f   :  { %1203 = dma.done.wait [#allocation6], 32  }
 0x480   :  { %1204 = vsyncadd [#allocation6], 4294967264 }
 0x481   :  { %855 = vsyncpa [#allocation5], 1 }
 0x482   :  { %856 = vsyncpa [#allocation8], 1 }
 0x483   :  { %857 = vsyncpa [#allocation11], 1 }
 0x484   :  { %858 = vsyncpa [#allocation6], 1 }

</bundles_post_ra>
